<compile_context>
chip_gen: v5e
topology: v5e:2x2
jax: 0.10.0
libtpu: 0.0.40
codegen_flags: <defaults>
</compile_context>

<pallas_src>
import functools
import math

import jax
import jax.numpy as jnp
from jax import lax
from jax.experimental import pallas as pl
from jax.experimental.pallas import tpu as pltpu


def _round_up(x, m):
    return (x + m - 1) // m * m


# ----------------------------------------------------------------------------
# Pallas kernel: strided 3x3 conv = 9 statically-unrolled accumulating matmuls
# ----------------------------------------------------------------------------
def _downsample_kernel(x_ref, w_ref, b_ref, o_ref, *, ho, wo, cin):
    # x_ref: (2, 2, ho+1, wo+1, cin)  parity planes of one padded batch, bf16
    # w_ref: (9, cin, TN)             per-tap weight slabs, bf16
    # b_ref: (1, TN)                  bias, f32
    # o_ref: (ho*wo, TN)              output tile, f32
    acc = jnp.zeros(o_ref.shape, jnp.float32)
    for dh in range(3):
        for dw in range(3):
            k = dh * 3 + dw
            p, q = dh % 2, dw % 2          # parity plane of this tap
            a, c = dh // 2, dw // 2        # static 0/1 shift inside the plane
            win = x_ref[p, q, pl.ds(a, ho), pl.ds(c, wo), :]   # (ho, wo, cin)
            xm = win.reshape(ho * wo, cin)
            acc = acc + jnp.dot(xm, w_ref[k],                  # bf16 x bf16
                                preferred_element_type=jnp.float32)
    o_ref[...] = (acc + b_ref[...]).astype(o_ref.dtype)


# ----------------------------------------------------------------------------
# Wrapper (NCHW in / NCHW out, mirrors the PyTorch module)
# ----------------------------------------------------------------------------
def downsample(params, x_nchw):
    w = params["w"]                                   # (3, 3, Cin, Cout) HWIO
    b = params["b"]                                   # (Cout,)
    B, Cin, H, W = x_nchw.shape
    KH, KW, Cin2, Cout = w.shape
    assert (KH, KW) == (3, 3) and Cin2 == Cin
    # TODO(synk): odd spatial sizes would need asymmetric parity planes.
    assert H % 2 == 0 and W % 2 == 0, "even spatial dims expected"
    Ho, Wo = H // 2, W // 2

    x = jnp.transpose(x_nchw, (0, 2, 3, 1))                        # NHWC
    xp = jnp.pad(x, ((0, 0), (1, 1), (1, 1), (0, 0)))              # (B,H+2,W+2,C)
    # Exact repartition into parity planes (no duplication):
    #   xpp[b, p, q, i, j, c] == xp[b, 2i+p, 2j+q, c]
    xpp = xp.reshape(B, Ho + 1, 2, Wo + 1, 2, Cin).transpose(0, 2, 4, 1, 3, 5)
    xpp = xpp.astype(jnp.bfloat16)

    # Lane-dense output channels: pad Cout to a multiple of 128.
    TN = 128
    Coutp = _round_up(Cout, TN)
    wk = w.reshape(9, Cin, Cout).astype(jnp.bfloat16)
    if Coutp != Cout:
        wk = jnp.pad(wk, ((0, 0), (0, 0), (0, Coutp - Cout)))
    bk = jnp.pad(b.astype(jnp.float32), (0, Coutp - Cout)).reshape(1, Coutp)
    nt = Coutp // TN

    out = pl.pallas_call(
        functools.partial(_downsample_kernel, ho=Ho, wo=Wo, cin=Cin),
        out_shape=jax.ShapeDtypeStruct((B, Ho * Wo, Coutp), jnp.float32),
        grid=(B, nt),
        in_specs=[
            # all 4 parity planes of one batch (block index repeats across the
            # inner Cout-tile axis -> Pallas skips the redundant input DMA)
            pl.BlockSpec((None, 2, 2, Ho + 1, Wo + 1, Cin),
                         lambda bb, n: (bb, 0, 0, 0, 0, 0)),
            # all 9 per-tap weight slabs for this Cout tile
            pl.BlockSpec((9, Cin, TN), lambda bb, n: (0, 0, n)),
            # bias (1, TN)
            pl.BlockSpec((1, TN), lambda bb, n: (0, n)),
        ],
        out_specs=pl.BlockSpec((None, Ho * Wo, TN), lambda bb, n: (bb, 0, n)),
        compiler_params=pltpu.CompilerParams(
            dimension_semantics=("parallel", "parallel")),
    )(xpp, wk, bk)

    y = out[:, :, :Cout].reshape(B, Ho, Wo, Cout)
    return jnp.transpose(y, (0, 3, 1, 2))                          # NCHW


# ----------------------------------------------------------------------------
# Parameter init (PyTorch Conv2d default: U(-s, s), s = 1/sqrt(fan_in))
# ----------------------------------------------------------------------------
def init_downsample(key, dim):
    kw, kb = jax.random.split(key)
    s = 1.0 / math.sqrt(9 * dim)
    w = jax.random.uniform(kw, (3, 3, dim, dim), jnp.float32, -s, s)
    b = jax.random.uniform(kb, (dim,), jnp.float32, -s, s)
    return {"w": w, "b": b}


# ----------------------------------------------------------------------------
if __name__ == "__main__":
    B, DIM, H, W = 2, 64, 16, 16
    key = jax.random.PRNGKey(0)
    kx, kp = jax.random.split(key)
    x = jax.random.normal(kx, (B, DIM, H, W), jnp.float32)
    params = init_downsample(kp, DIM)

    out = jax.jit(downsample)(params, x)
    out = jax.block_until_ready(out)
    assert out.shape == (B, DIM, H // 2, W // 2), out.shape
    assert bool(jnp.all(jnp.isfinite(out)))

    # numerical check against XLA's conv (same bf16-cast operands, f32 accum)
    x_nhwc = jnp.transpose(x, (0, 2, 3, 1)).astype(jnp.bfloat16).astype(jnp.float32)
    w_f = params["w"].astype(jnp.bfloat16).astype(jnp.float32)
    ref = lax.conv_general_dilated(
        x_nhwc, w_f, window_strides=(2, 2), padding=((1, 1), (1, 1)),
        dimension_numbers=("NHWC", "HWIO", "NHWC"),
        precision=lax.Precision.HIGHEST) + params["b"][None, None, None, :]
    ref = jnp.transpose(ref, (0, 3, 1, 2))
    assert bool(jnp.allclose(out, ref, atol=2e-2, rtol=2e-2))

    print("KERNEL_OK")
</pallas_src>

<mosaic_0001>
module attributes {stable_mosaic.version = 11 : i64} {
  func.func @_downsample_kernel(%arg0: i32, %arg1: i32, %arg2: memref<1x2x2x9x9x64xbf16, #tpu.memory_space<vmem>>, %arg3: memref<9x64x128xbf16, #tpu.memory_space<vmem>>, %arg4: memref<1x128xf32, #tpu.memory_space<vmem>>, %arg5: memref<1x64x128xf32, #tpu.memory_space<vmem>>) attributes {dimension_semantics = [#tpu.dimension_semantics<parallel>, #tpu.dimension_semantics<parallel>], iteration_bounds = array<i64: 2, 1>, scalar_prefetch = 0 : i64, scratch_operands = 0 : i64, tpu.core_type = #tpu.core_type<tc>, window_params = [{transform_indices = @transform_0, window_bounds = array<i64: 1, 2, 2, 9, 9, 64>}, {transform_indices = @transform_1, window_bounds = array<i64: 9, 64, 128>}, {transform_indices = @transform_2, window_bounds = array<i64: 1, 128>}, {transform_indices = @transform_3, window_bounds = array<i64: 1, 64, 128>}]} {
    %cst = arith.constant 0.000000e+00 : f32
    %0 = vector.broadcast %cst : f32 to vector<64x128xf32>
    %c0 = arith.constant 0 : index
    %c0_0 = arith.constant 0 : index
    %c0_1 = arith.constant 0 : index
    %c0_2 = arith.constant 0 : index
    %c0_3 = arith.constant 0 : index
    %c0_4 = arith.constant 0 : index
    %1 = vector.load %arg2[%c0, %c0_0, %c0_1, %c0_2, %c0_3, %c0_4] : memref<1x2x2x9x9x64xbf16, #tpu.memory_space<vmem>>, vector<1x1x1x8x8x64xbf16>
    %2 = vector.shape_cast %1 : vector<1x1x1x8x8x64xbf16> to vector<8x8x64xbf16>
    %3 = vector.shape_cast %2 : vector<8x8x64xbf16> to vector<64x64xbf16>
    %c0_5 = arith.constant 0 : index
    %c0_6 = arith.constant 0 : index
    %c0_7 = arith.constant 0 : index
    %4 = vector.load %arg3[%c0_5, %c0_6, %c0_7] : memref<9x64x128xbf16, #tpu.memory_space<vmem>>, vector<1x64x128xbf16>
    %5 = vector.shape_cast %4 : vector<1x64x128xbf16> to vector<64x128xbf16>
    %cst_8 = arith.constant dense<0.000000e+00> : vector<64x128xf32>
    %6 = tpu.matmul %3, %5, %cst_8 {dimension_numbers = #tpu.dot_dimension_numbers<[1], [0], [0], [1], [0, 0, 1, 1], [], []>} : vector<64x64xbf16>, vector<64x128xbf16>, vector<64x128xf32> -> vector<64x128xf32>
    %7 = arith.addf %0, %6 : vector<64x128xf32>
    %c0_9 = arith.constant 0 : index
    %c0_10 = arith.constant 0 : index
    %c1 = arith.constant 1 : index
    %c0_11 = arith.constant 0 : index
    %c0_12 = arith.constant 0 : index
    %c0_13 = arith.constant 0 : index
    %8 = vector.load %arg2[%c0_9, %c0_10, %c1, %c0_11, %c0_12, %c0_13] : memref<1x2x2x9x9x64xbf16, #tpu.memory_space<vmem>>, vector<1x1x1x8x8x64xbf16>
    %9 = vector.shape_cast %8 : vector<1x1x1x8x8x64xbf16> to vector<8x8x64xbf16>
    %10 = vector.shape_cast %9 : vector<8x8x64xbf16> to vector<64x64xbf16>
    %c1_14 = arith.constant 1 : index
    %c0_15 = arith.constant 0 : index
    %c0_16 = arith.constant 0 : index
    %11 = vector.load %arg3[%c1_14, %c0_15, %c0_16] : memref<9x64x128xbf16, #tpu.memory_space<vmem>>, vector<1x64x128xbf16>
    %12 = vector.shape_cast %11 : vector<1x64x128xbf16> to vector<64x128xbf16>
    %cst_17 = arith.constant dense<0.000000e+00> : vector<64x128xf32>
    %13 = tpu.matmul %10, %12, %cst_17 {dimension_numbers = #tpu.dot_dimension_numbers<[1], [0], [0], [1], [0, 0, 1, 1], [], []>} : vector<64x64xbf16>, vector<64x128xbf16>, vector<64x128xf32> -> vector<64x128xf32>
    %14 = arith.addf %7, %13 : vector<64x128xf32>
    %c0_18 = arith.constant 0 : index
    %c0_19 = arith.constant 0 : index
    %c0_20 = arith.constant 0 : index
    %c0_21 = arith.constant 0 : index
    %c1_22 = arith.constant 1 : index
    %c0_23 = arith.constant 0 : index
    %15 = vector.load %arg2[%c0_18, %c0_19, %c0_20, %c0_21, %c1_22, %c0_23] : memref<1x2x2x9x9x64xbf16, #tpu.memory_space<vmem>>, vector<1x1x1x8x8x64xbf16>
    %16 = vector.shape_cast %15 : vector<1x1x1x8x8x64xbf16> to vector<8x8x64xbf16>
    %17 = vector.shape_cast %16 : vector<8x8x64xbf16> to vector<64x64xbf16>
    %c2 = arith.constant 2 : index
    %c0_24 = arith.constant 0 : index
    %c0_25 = arith.constant 0 : index
    %18 = vector.load %arg3[%c2, %c0_24, %c0_25] : memref<9x64x128xbf16, #tpu.memory_space<vmem>>, vector<1x64x128xbf16>
    %19 = vector.shape_cast %18 : vector<1x64x128xbf16> to vector<64x128xbf16>
    %cst_26 = arith.constant dense<0.000000e+00> : vector<64x128xf32>
    %20 = tpu.matmul %17, %19, %cst_26 {dimension_numbers = #tpu.dot_dimension_numbers<[1], [0], [0], [1], [0, 0, 1, 1], [], []>} : vector<64x64xbf16>, vector<64x128xbf16>, vector<64x128xf32> -> vector<64x128xf32>
    %21 = arith.addf %14, %20 : vector<64x128xf32>
    %c0_27 = arith.constant 0 : index
    %c1_28 = arith.constant 1 : index
    %c0_29 = arith.constant 0 : index
    %c0_30 = arith.constant 0 : index
    %c0_31 = arith.constant 0 : index
    %c0_32 = arith.constant 0 : index
    %22 = vector.load %arg2[%c0_27, %c1_28, %c0_29, %c0_30, %c0_31, %c0_32] : memref<1x2x2x9x9x64xbf16, #tpu.memory_space<vmem>>, vector<1x1x1x8x8x64xbf16>
    %23 = vector.shape_cast %22 : vector<1x1x1x8x8x64xbf16> to vector<8x8x64xbf16>
    %24 = vector.shape_cast %23 : vector<8x8x64xbf16> to vector<64x64xbf16>
    %c3 = arith.constant 3 : index
    %c0_33 = arith.constant 0 : index
    %c0_34 = arith.constant 0 : index
    %25 = vector.load %arg3[%c3, %c0_33, %c0_34] : memref<9x64x128xbf16, #tpu.memory_space<vmem>>, vector<1x64x128xbf16>
    %26 = vector.shape_cast %25 : vector<1x64x128xbf16> to vector<64x128xbf16>
    %cst_35 = arith.constant dense<0.000000e+00> : vector<64x128xf32>
    %27 = tpu.matmul %24, %26, %cst_35 {dimension_numbers = #tpu.dot_dimension_numbers<[1], [0], [0], [1], [0, 0, 1, 1], [], []>} : vector<64x64xbf16>, vector<64x128xbf16>, vector<64x128xf32> -> vector<64x128xf32>
    %28 = arith.addf %21, %27 : vector<64x128xf32>
    %c0_36 = arith.constant 0 : index
    %c1_37 = arith.constant 1 : index
    %c1_38 = arith.constant 1 : index
    %c0_39 = arith.constant 0 : index
    %c0_40 = arith.constant 0 : index
    %c0_41 = arith.constant 0 : index
    %29 = vector.load %arg2[%c0_36, %c1_37, %c1_38, %c0_39, %c0_40, %c0_41] : memref<1x2x2x9x9x64xbf16, #tpu.memory_space<vmem>>, vector<1x1x1x8x8x64xbf16>
    %30 = vector.shape_cast %29 : vector<1x1x1x8x8x64xbf16> to vector<8x8x64xbf16>
    %31 = vector.shape_cast %30 : vector<8x8x64xbf16> to vector<64x64xbf16>
    %c4 = arith.constant 4 : index
    %c0_42 = arith.constant 0 : index
    %c0_43 = arith.constant 0 : index
    %32 = vector.load %arg3[%c4, %c0_42, %c0_43] : memref<9x64x128xbf16, #tpu.memory_space<vmem>>, vector<1x64x128xbf16>
    %33 = vector.shape_cast %32 : vector<1x64x128xbf16> to vector<64x128xbf16>
    %cst_44 = arith.constant dense<0.000000e+00> : vector<64x128xf32>
    %34 = tpu.matmul %31, %33, %cst_44 {dimension_numbers = #tpu.dot_dimension_numbers<[1], [0], [0], [1], [0, 0, 1, 1], [], []>} : vector<64x64xbf16>, vector<64x128xbf16>, vector<64x128xf32> -> vector<64x128xf32>
    %35 = arith.addf %28, %34 : vector<64x128xf32>
    %c0_45 = arith.constant 0 : index
    %c1_46 = arith.constant 1 : index
    %c0_47 = arith.constant 0 : index
    %c0_48 = arith.constant 0 : index
    %c1_49 = arith.constant 1 : index
    %c0_50 = arith.constant 0 : index
    %36 = vector.load %arg2[%c0_45, %c1_46, %c0_47, %c0_48, %c1_49, %c0_50] : memref<1x2x2x9x9x64xbf16, #tpu.memory_space<vmem>>, vector<1x1x1x8x8x64xbf16>
    %37 = vector.shape_cast %36 : vector<1x1x1x8x8x64xbf16> to vector<8x8x64xbf16>
    %38 = vector.shape_cast %37 : vector<8x8x64xbf16> to vector<64x64xbf16>
    %c5 = arith.constant 5 : index
    %c0_51 = arith.constant 0 : index
    %c0_52 = arith.constant 0 : index
    %39 = vector.load %arg3[%c5, %c0_51, %c0_52] : memref<9x64x128xbf16, #tpu.memory_space<vmem>>, vector<1x64x128xbf16>
    %40 = vector.shape_cast %39 : vector<1x64x128xbf16> to vector<64x128xbf16>
    %cst_53 = arith.constant dense<0.000000e+00> : vector<64x128xf32>
    %41 = tpu.matmul %38, %40, %cst_53 {dimension_numbers = #tpu.dot_dimension_numbers<[1], [0], [0], [1], [0, 0, 1, 1], [], []>} : vector<64x64xbf16>, vector<64x128xbf16>, vector<64x128xf32> -> vector<64x128xf32>
    %42 = arith.addf %35, %41 : vector<64x128xf32>
    %c0_54 = arith.constant 0 : index
    %c0_55 = arith.constant 0 : index
    %c0_56 = arith.constant 0 : index
    %c1_57 = arith.constant 1 : index
    %c0_58 = arith.constant 0 : index
    %c0_59 = arith.constant 0 : index
    %43 = vector.load %arg2[%c0_54, %c0_55, %c0_56, %c1_57, %c0_58, %c0_59] : memref<1x2x2x9x9x64xbf16, #tpu.memory_space<vmem>>, vector<1x1x1x8x8x64xbf16>
    %44 = vector.shape_cast %43 : vector<1x1x1x8x8x64xbf16> to vector<8x8x64xbf16>
    %45 = vector.shape_cast %44 : vector<8x8x64xbf16> to vector<64x64xbf16>
    %c6 = arith.constant 6 : index
    %c0_60 = arith.constant 0 : index
    %c0_61 = arith.constant 0 : index
    %46 = vector.load %arg3[%c6, %c0_60, %c0_61] : memref<9x64x128xbf16, #tpu.memory_space<vmem>>, vector<1x64x128xbf16>
    %47 = vector.shape_cast %46 : vector<1x64x128xbf16> to vector<64x128xbf16>
    %cst_62 = arith.constant dense<0.000000e+00> : vector<64x128xf32>
    %48 = tpu.matmul %45, %47, %cst_62 {dimension_numbers = #tpu.dot_dimension_numbers<[1], [0], [0], [1], [0, 0, 1, 1], [], []>} : vector<64x64xbf16>, vector<64x128xbf16>, vector<64x128xf32> -> vector<64x128xf32>
    %49 = arith.addf %42, %48 : vector<64x128xf32>
    %c0_63 = arith.constant 0 : index
    %c0_64 = arith.constant 0 : index
    %c1_65 = arith.constant 1 : index
    %c1_66 = arith.constant 1 : index
    %c0_67 = arith.constant 0 : index
    %c0_68 = arith.constant 0 : index
    %50 = vector.load %arg2[%c0_63, %c0_64, %c1_65, %c1_66, %c0_67, %c0_68] : memref<1x2x2x9x9x64xbf16, #tpu.memory_space<vmem>>, vector<1x1x1x8x8x64xbf16>
    %51 = vector.shape_cast %50 : vector<1x1x1x8x8x64xbf16> to vector<8x8x64xbf16>
    %52 = vector.shape_cast %51 : vector<8x8x64xbf16> to vector<64x64xbf16>
    %c7 = arith.constant 7 : index
    %c0_69 = arith.constant 0 : index
    %c0_70 = arith.constant 0 : index
    %53 = vector.load %arg3[%c7, %c0_69, %c0_70] : memref<9x64x128xbf16, #tpu.memory_space<vmem>>, vector<1x64x128xbf16>
    %54 = vector.shape_cast %53 : vector<1x64x128xbf16> to vector<64x128xbf16>
    %cst_71 = arith.constant dense<0.000000e+00> : vector<64x128xf32>
    %55 = tpu.matmul %52, %54, %cst_71 {dimension_numbers = #tpu.dot_dimension_numbers<[1], [0], [0], [1], [0, 0, 1, 1], [], []>} : vector<64x64xbf16>, vector<64x128xbf16>, vector<64x128xf32> -> vector<64x128xf32>
    %56 = arith.addf %49, %55 : vector<64x128xf32>
    %c0_72 = arith.constant 0 : index
    %c0_73 = arith.constant 0 : index
    %c0_74 = arith.constant 0 : index
    %c1_75 = arith.constant 1 : index
    %c1_76 = arith.constant 1 : index
    %c0_77 = arith.constant 0 : index
    %57 = vector.load %arg2[%c0_72, %c0_73, %c0_74, %c1_75, %c1_76, %c0_77] : memref<1x2x2x9x9x64xbf16, #tpu.memory_space<vmem>>, vector<1x1x1x8x8x64xbf16>
    %58 = vector.shape_cast %57 : vector<1x1x1x8x8x64xbf16> to vector<8x8x64xbf16>
    %59 = vector.shape_cast %58 : vector<8x8x64xbf16> to vector<64x64xbf16>
    %c8 = arith.constant 8 : index
    %c0_78 = arith.constant 0 : index
    %c0_79 = arith.constant 0 : index
    %60 = vector.load %arg3[%c8, %c0_78, %c0_79] : memref<9x64x128xbf16, #tpu.memory_space<vmem>>, vector<1x64x128xbf16>
    %61 = vector.shape_cast %60 : vector<1x64x128xbf16> to vector<64x128xbf16>
    %cst_80 = arith.constant dense<0.000000e+00> : vector<64x128xf32>
    %62 = tpu.matmul %59, %61, %cst_80 {dimension_numbers = #tpu.dot_dimension_numbers<[1], [0], [0], [1], [0, 0, 1, 1], [], []>} : vector<64x64xbf16>, vector<64x128xbf16>, vector<64x128xf32> -> vector<64x128xf32>
    %63 = arith.addf %56, %62 : vector<64x128xf32>
    %c0_81 = arith.constant 0 : index
    %c0_82 = arith.constant 0 : index
    %64 = vector.load %arg4[%c0_81, %c0_82] : memref<1x128xf32, #tpu.memory_space<vmem>>, vector<1x128xf32>
    %65 = vector.broadcast %64 : vector<1x128xf32> to vector<64x128xf32>
    %66 = arith.addf %63, %65 : vector<64x128xf32>
    %c0_83 = arith.constant 0 : index
    %c0_84 = arith.constant 0 : index
    %c0_85 = arith.constant 0 : index
    %67 = vector.load %arg5[%c0_83, %c0_84, %c0_85] : memref<1x64x128xf32, #tpu.memory_space<vmem>>, vector<1x64x128xf32>
    %68 = vector.shape_cast %67 : vector<1x64x128xf32> to vector<64x128xf32>
    %69 = vector.shape_cast %66 : vector<64x128xf32> to vector<1x64x128xf32>
    tpu.vector_store %arg5[%c0_83, %c0_84, %c0_85], %69 {strides = array<i32>} : memref<1x64x128xf32, #tpu.memory_space<vmem>>, vector<1x64x128xf32>,
    return
  }
  func.func @transform_0(%arg0: i32, %arg1: i32) -> (i32, i32, i32, i32, i32, i32) {
    %c0_i32 = arith.constant 0 : i32
    %c0_i32_0 = arith.constant 0 : i32
    %c0_i32_1 = arith.constant 0 : i32
    %c0_i32_2 = arith.constant 0 : i32
    %c0_i32_3 = arith.constant 0 : i32
    %c0_i32_4 = arith.constant 0 : i32
    return %arg0, %c0_i32, %c0_i32_0, %c0_i32_1, %c0_i32_2, %c0_i32_3 : i32, i32, i32, i32, i32, i32
  }
  func.func @transform_1(%arg0: i32, %arg1: i32) -> (i32, i32, i32) {
    %c0_i32 = arith.constant 0 : i32
    %c0_i32_0 = arith.constant 0 : i32
    %c0_i32_1 = arith.constant 0 : i32
    return %c0_i32, %c0_i32_0, %arg1 : i32, i32, i32
  }
  func.func @transform_2(%arg0: i32, %arg1: i32) -> (i32, i32) {
    %c0_i32 = arith.constant 0 : i32
    %c0_i32_0 = arith.constant 0 : i32
    return %c0_i32, %arg1 : i32, i32
  }
  func.func @transform_3(%arg0: i32, %arg1: i32) -> (i32, i32, i32) {
    %c0_i32 = arith.constant 0 : i32
    %c0_i32_0 = arith.constant 0 : i32
    return %arg0, %c0_i32, %arg1 : i32, i32, i32
  }
}

</mosaic_0001>

<bundles_post_ra>
// kernel: downsample.1
= control target key start
LH: loop header
LB: loop body
LE: loop exit
PB: predicated region body
PF: predicated region fallthrough
CT: control target
= control target key end

     0   :  { %s2233_s12 = smov 0   ;;  %s2235_s13 = smov 0   ;;  %s2649_s0 = inlined_call_operand.vmem [shape: bf16[2,2,2,9,9,64], index: 0, kind: input, shape index: {}]   ;;  %s2650_s1 = inlined_call_operand.vmem [shape: bf16[9,64,128], index: 1, kind: input, shape index: {}]   ;;  %s2651_s2 = inlined_call_operand.vmem [shape: f32[1,128], index: 2, kind: input, shape index: {}]   ;;  %s2652_s3 = inlined_call_operand.vmem [shape: f32[2,64,128], index: 3, kind: output, shape index: {}]  }
   0x1   :  { %s2237_s14 = smov 0  }
   0x2 LB: > { %s25_s15 = sadd.s32 1, %s2207_s13  ;;  %p1672_p0 = scmp.ge.s32.totalorder %s2211_s14, 1  ;;  %s2211_s14 = sphi %s2237_s14, %s13_s14   ;;  %s2207_s13 = sphi %s2235_s13, %s2656_s13   ;;  %s2203_s12 = sphi %s2233_s12, %s2655_s12  }
   0x3   : > { %p27_p1 = scmp.ge.s32.totalorder %s25_s15, 2  ;;  %p168_p2 = scmp.lt.s32.totalorder %s2211_s14, 3 }
   0x5   : > { %s2658_s15 = smov (%p27_p1, %s25_s15), 0  ;;  %p169_p3 = pnand %p1672_p0, %p168_p2 }
   0x6   : > { %p202_p4 = scmp.lt.s32.totalorder (!%p169_p3), %s2203_s12, 1 }
   0x7   : > { %172 = sbr.rel (%p169_p3) target bundleno = 305 (0x131), region = 32 }
   0xc   : > { %v2106_v0 = vld [vmem:[%s2650_s1 + $0x38] sm:$0xff]  ;;  %v2105_v1 = vld [vmem:[%s2650_s1 + $0x30] sm:$0xff]  ;;  %s2660_s12 = smov (!%p202_p4, %s2203_s12), 1  ;;  %v2104_v2 = vld [vmem:[%s2650_s1 + $0x28] sm:$0xff]  ;;  %vm301_vm0 = vcmask 523264  }
   0xd   : > { %2151 = vmatpush.bf16.msra.mxu1 %v2106_v0  ;;  %2152 = vmatpush.bf16.msra.mxu2 %v2106_v0  ;;  %s2163_s20 = smul.u32 288, %s2660_s12  ;;  %v2103_v4 = vld [vmem:[%s2650_s1 + $0x20] sm:$0xff]  ;;  %v2110_v20 = vld [vmem:[%s2650_s1 + $0x58] sm:$0xff]  ;;  %v2109_v35 = vld [vmem:[%s2650_s1 + $0x50] sm:$0xff]  ;;  %vm444_vm1 = vsmask.f32 3328 }
   0xe   : > { %2153 = vmatpush.bf16.msra.mxu3 %v2106_v0  ;;  %318 = vmatpush.bf16.msra.mxu0 %v2106_v0  ;;  %v2098_v21 = vld [vmem:[%s2650_s1 + $0x18] sm:$0xff]  ;;  %v2097_v36 = vld [vmem:[%s2650_s1 + $0x10] sm:$0xff]  ;;  %vm445_vm2 = vsmask.f32 7440  ;;  %v2108_v47 = vld [vmem:[%s2650_s1 + $0x48] sm:$0xff] }
   0xf   : > { %s2266_s25 = scalar_lea.vmem %s2649_s0, %s2163_s20  ;;  %v2118_v32 = vld [vmem:[%s2650_s1 + $0x78] sm:$0xff]  ;;  %v2117_v38 = vld [vmem:[%s2650_s1 + $0x70] sm:$0xff]  ;;  %vm2314_vm3 = vmor %vm444_vm1, %vm445_vm2 }
  0x10   : > { %v1698_v3 = vld [vmem:[%s2266_s25 + $0x58] sm:$0xf]  ;;  %v2100_v5 = vld [vmem:[%s2266_s25 + $0x5c] sm:$0xf0]  ;;  %v1702_v6 = vld [vmem:[%s2266_s25 + $0x68] sm:$0xf] }
  0x11   : > { %2154 = vmatpush.bf16.msra.mxu1 %v2105_v1  ;;  %2155 = vmatpush.bf16.msra.mxu2 %v2105_v1  ;;  %v2101_v7 = vld [vmem:[%s2266_s25 + $0x6c] sm:$0xf0]  ;;  %v1706_v8 = vld [vmem:[%s2266_s25 + $0x78] sm:$0xf]  ;;  %v2102_v9 = vld [vmem:[%s2266_s25 + $0x7c] sm:$0xf0]  ;;  %v1699_v18 = vor.u32 %v2100_v5, %v1698_v3 }
  0x12   : > { %2156 = vmatpush.bf16.msra.mxu3 %v2105_v1  ;;  %319 = vmatpush.bf16.msra.mxu0 %v2105_v1  ;;  %v1694_v10 = vld [vmem:[%s2266_s25 + $0x48] sm:$0xf]  ;;  %v2099_v11 = vld [vmem:[%s2266_s25 + $0x4c] sm:$0xf0]  ;;  %v428_v12 = vld [vmem:[%s2266_s25] sm:$0xf]  ;;  %v1703_v19 = vor.u32 %v2101_v7, %v1702_v6  ;;  %v1707_v24 = vor.u32 %v2102_v9, %v1706_v8 }
  0x13   : > { %v429_v13 = vld [vmem:[%s2266_s25 + $0x4] sm:$0x1]  ;;  %v430_v14 = vld [vmem:[%s2266_s25 + $0x8] sm:$0xf]  ;;  %v431_v15 = vld [vmem:[%s2266_s25 + $0xc] sm:$0x1]  ;;  %v1695_v25 = vor.u32 %v2099_v11, %v1694_v10 }
  0x14   : > { %v448_v16 = vshrl.u32 %v428_v12, 16  ;;  %v451_v17 = vshll.u32 %v428_v12, 16  ;;  %v462_v22 = vshrl.u32 %v430_v14, 16  ;;  %v465_v23 = vshll.u32 %v430_v14, 16  ;;  %v2126_v33 = vld [vmem:[%s2650_s1 + $0x98] sm:$0xff]  ;;  %v2125_v44 = vld [vmem:[%s2650_s1 + $0x90] sm:$0xff] }
  0x15   : > { %2157 = vmatpush.bf16.msra.mxu1 %v2104_v2  ;;  %2158 = vmatpush.bf16.msra.mxu2 %v2104_v2  ;;  %v457_v28 = vshll.u32 %v429_v13, 16  ;;  %v471_v31 = vshll.u32 %v431_v15, 16  ;;  %v432_v43 = vld [vmem:[%s2266_s25 + $0x10] sm:$0xf]  ;;  %v434_v46 = vld [vmem:[%s2266_s25 + $0x18] sm:$0xf] }
  0x16   : > { %2159 = vmatpush.bf16.msra.mxu3 %v2104_v2  ;;  %320 = vmatpush.bf16.msra.mxu0 %v2104_v2  ;;  %v450_v26 = vrot.slane %v448_v16, 4  ;;  %v453_v27 = vrot.slane %v451_v17, 5  ;;  %v464_v29 = vrot.slane %v462_v22, 4  ;;  %v467_v30 = vrot.slane %v465_v23, 5  ;;  %v2096_v48 = vld [vmem:[%s2650_s1 + $0x8] sm:$0xff]  ;;  %v2107_v53 = vld [vmem:[%s2650_s1 + $0x40] sm:$0xff] }
  0x17   : > { %v459_v40 = vrot.slane %v457_v28, 5  ;;  %v473_v42 = vrot.slane %v471_v31, 5  ;;  %v476_v49 = vshrl.u32 %v432_v43, 16  ;;  %v479_v50 = vshll.u32 %v432_v43, 16  ;;  %v2116_v51 = vld [vmem:[%s2650_s1 + $0x68] sm:$0xff]  ;;  %v2095_v58 = vld [vmem:[%s2650_s1] sm:$0xff] }
  0x18   : > { %v454_v34 = vor.u32 %v453_v27, %v450_v26  ;;  %v468_v37 = vor.u32 %v467_v30, %v464_v29  ;;  %v2124_v52 = vld [vmem:[%s2650_s1 + $0x88] sm:$0xff]  ;;  %v490_v56 = vshrl.u32 %v434_v46, 16  ;;  %v493_v57 = vshll.u32 %v434_v46, 16  ;;  %v1730_v59 = vld [vmem:[%s2266_s25] sm:$0xf]  ;;  %v2138_v63 = vld [vmem:[%s2650_s1 + $0xd8] sm:$0xff] }
  0x19   : > { %2160 = vmatpush.bf16.msra.mxu1 %v2103_v4  ;;  %2161 = vmatpush.bf16.msra.mxu2 %v2103_v4  ;;  %v2091_v60 = vld [vmem:[%s2266_s25 + $0x4] sm:$0xf0]  ;;  %v1810_v61 = vld [vmem:[%s2266_s25 + $0x90] sm:$0xf]  ;;  %v2111_v62 = vld [vmem:[%s2266_s25 + $0x94] sm:$0xf0] }
  0x1a   : > { %2162 = vmatpush.bf16.msra.mxu3 %v2103_v4  ;;  %321 = vmatpush.bf16.msra.mxu0 %v2103_v4  ;;  %v455_v39 = vrot.slane %v454_v34, 4  ;;  %v469_v41 = vrot.slane %v468_v37, 4  ;;  %v2115_v0 = vld [vmem:[%s2650_s1 + $0x60] sm:$0xff]  ;;  %v1862_v3 = vld [vmem:[%s2266_s25 + $0xd8] sm:$0xf]  ;;  %v478_v6 = vrot.slane %v476_v49, 4  ;;  %v1731_v13 = vor.u32 %v2091_v60, %v1730_v59 }
  0x1b   : > { %v2130_v4 = vld [vmem:[%s2650_s1 + $0xb8] sm:$0xff]  ;;  %v2119_v5 = vld [vmem:[%s2266_s25 + $0xdc] sm:$0xf0]  ;;  %v481_v7 = vrot.slane %v479_v50, 5  ;;  %v492_v8 = vrot.slane %v490_v56, 4  ;;  %v495_v9 = vrot.slane %v493_v57, 5  ;;  %v1811_v17 = vor.u32 %v2111_v62, %v1810_v61 }
  0x1c   : > { %1725 = vmatmul.msk.bf16.vlgmr.msra.gmra.mxu1 %vm301_vm0, %v1699_v18  ;;  %1726 = vmatmul.msk.bf16.vlgmr.msra.gmra.mxu2 %vm301_vm0, %v1703_v19  ;;  %v460_v54 = vsel %vm2314_vm3, %v455_v39, %v459_v40  ;;  %v474_v55 = vsel %vm2314_vm3, %v469_v41, %v473_v42  ;;  %v2123_v10 = vld [vmem:[%s2650_s1 + $0x80] sm:$0xff]  ;;  %v433_v11 = vld [vmem:[%s2266_s25 + $0x14] sm:$0x1]  ;;  %v435_v12 = vld [vmem:[%s2266_s25 + $0x1c] sm:$0x1]  ;;  %v1863_v18 = vor.u32 %v2119_v5, %v1862_v3 }
  0x1d   : > { %620 = vmatpush.bf16.msrb.mxu2 %v2110_v20  ;;  %403 = vmatpush.bf16.msrb.mxu1 %v2098_v21  ;;  %v568_v1 = vunpack.c.l.b16 %v460_v54  ;;  %v569_v2 = vunpack.c.l.b16 %v474_v55  ;;  %v2146_v14 = vld [vmem:[%s2650_s1 + $0xf8] sm:$0xff]  ;;  %v482_v19 = vor.u32 %v481_v7, %v478_v6  ;;  %v485_v20 = vshll.u32 %v433_v11, 16  ;;  %v2137_v23 = vld [vmem:[%s2650_s1 + $0xd0] sm:$0xff]  ;;  %v436_v31 = vld [vmem:[%s2266_s25 + $0x20] sm:$0xf] }
  0x1e   : > { %1727 = vmatmul.msk.bf16.vlgmr.msra.gmra.mxu3 %vm301_vm0, %v1707_v24  ;;  %1724 = vmatmul.msk.bf16.vlgmr.msra.gmra.mxu0 %vm301_vm0, %v1695_v25  ;;  %v2150_v15 = vld [vmem:[%s2650_s1 + $0x118] sm:$0xff]  ;;  %v496_v21 = vor.u32 %v495_v9, %v492_v8  ;;  %v499_v22 = vshll.u32 %v435_v12, 16  ;;  %v2129_v24 = vld [vmem:[%s2650_s1 + $0xb0] sm:$0xff]  ;;  %v2128_v34 = vld [vmem:[%s2650_s1 + $0xa8] sm:$0xff]  ;;  %v504_v37 = vshrl.u32 %v436_v31, 16 }
  0x1f   : > { %731 = vmatpush.bf16.msrb.mxu3 %v2118_v32  ;;  %842 = vmatpush.bf16.msrb.mxu0 %v2126_v33  ;;  %v576_v16 = vpack.c.b16 %v569_v2, %v568_v1  ;;  %v2145_v25 = vld [vmem:[%s2650_s1 + $0xf0] sm:$0xff]  ;;  %v483_v27 = vrot.slane %v482_v19, 4  ;;  %v487_v28 = vrot.slane %v485_v20, 5  ;;  %v438_v32 = vld [vmem:[%s2266_s25 + $0x28] sm:$0xf]  ;;  %v2135_v8 = vld [vmem:[%s2650_s1 + $0xc0] sm:$0xff] }
  0x20   : > { %v2149_v26 = vld [vmem:[%s2650_s1 + $0x110] sm:$0xff]  ;;  %v497_v29 = vrot.slane %v496_v21, 4  ;;  %v501_v30 = vrot.slane %v499_v22, 5  ;;  %v2136_v33 = vld [vmem:[%s2650_s1 + $0xc8] sm:$0xff]  ;;  %v518_v41 = vshrl.u32 %v438_v32, 16  ;;  %v521_v42 = vshll.u32 %v438_v32, 16 }
  0x21   : > { %621 = vmatpush.bf16.msrb.mxu2 %v2109_v35  ;;  %404 = vmatpush.bf16.msrb.mxu1 %v2097_v36  ;;  %v2144_v35 = vld [vmem:[%s2650_s1 + $0xe8] sm:$0xff]  ;;  %v488_v39 = vsel %vm2314_vm3, %v483_v27, %v487_v28  ;;  %v1734_v43 = vld [vmem:[%s2266_s25 + $0x10] sm:$0xf]  ;;  %v437_v50 = vld [vmem:[%s2266_s25 + $0x24] sm:$0x1] }
  0x22   : > { %v2148_v36 = vld [vmem:[%s2650_s1 + $0x108] sm:$0xff]  ;;  %v502_v40 = vsel %vm2314_vm3, %v497_v29, %v501_v30  ;;  %v570_v46 = vunpack.c.l.b16 %v488_v39  ;;  %v523_v54 = vrot.slane %v521_v42, 5  ;;  %v2120_v56 = vld [vmem:[%s2266_s25 + $0xec] sm:$0xf0]  ;;  %v513_v61 = vshll.u32 %v437_v50, 16  ;;  %v2143_v9 = vld [vmem:[%s2650_s1 + $0xe0] sm:$0xff] }
  0x23   : > { %732 = vmatpush.bf16.msrb.mxu3 %v2117_v38  ;;  %843 = vmatpush.bf16.msrb.mxu0 %v2125_v44  ;;  %v507_v38 = vshll.u32 %v436_v31, 16  ;;  %v2092_v44 = vld [vmem:[%s2266_s25 + $0x14] sm:$0xf0]  ;;  %v2112_v49 = vld [vmem:[%s2266_s25 + $0xa4] sm:$0xf0] }
  0x24   : > { %v1866_v55 = vld [vmem:[%s2266_s25 + $0xe8] sm:$0xf]  ;;  %v439_v57 = vld [vmem:[%s2266_s25 + $0x2c] sm:$0x1]  ;;  %v440_v2 = vld [vmem:[%s2266_s25 + $0x30] sm:$0xf] }
  0x25   : > { %622 = vmatpush.bf16.msrb.mxu2 %v2108_v47  ;;  %405 = vmatpush.bf16.msrb.mxu1 %v2096_v48  ;;  %v571_v47 = vunpack.c.l.b16 %v502_v40  ;;  %v1814_v48 = vld [vmem:[%s2266_s25 + $0xa0] sm:$0xf]  ;;  %v1867_v62 = vor.u32 %v2120_v56, %v1866_v55  ;;  %v527_v1 = vshll.u32 %v439_v57, 16  ;;  %v442_v3 = vld [vmem:[%s2266_s25 + $0x38] sm:$0xf]  ;;  %v532_v11 = vshrl.u32 %v440_v2, 16 }
  0x26   : > { %v1815_v60 = vor.u32 %v2112_v49, %v1814_v48  ;;  %v535_v12 = vshll.u32 %v440_v2, 16  ;;  %v441_v22 = vld [vmem:[%s2266_s25 + $0x34] sm:$0x1]  ;;  %v2093_v27 = vld [vmem:[%s2266_s25 + $0x24] sm:$0xf0] }
  0x27   : > { %733 = vmatpush.bf16.msrb.mxu3 %v2116_v51  ;;  %844 = vmatpush.bf16.msrb.mxu0 %v2124_v52  ;;  %v506_v51 = vrot.slane %v504_v37, 4  ;;  %v509_v52 = vrot.slane %v507_v38, 5  ;;  %v577_v59 = vpack.c.b16 %v571_v47, %v570_v46  ;;  %v529_v7 = vrot.slane %v527_v1, 5  ;;  %v1818_v28 = vld [vmem:[%s2266_s25 + $0xb0] sm:$0xf] }
  0x28   : > { %v537_v19 = vrot.slane %v535_v12, 5  ;;  %v2113_v29 = vld [vmem:[%s2266_s25 + $0xb4] sm:$0xf0]  ;;  %v2121_v31 = vld [vmem:[%s2266_s25 + $0xfc] sm:$0xf0] }
  0x29   : > { %623 = vmatpush.bf16.msrb.mxu2 %v2107_v53  ;;  %406 = vmatpush.bf16.msrb.mxu1 %v2095_v58  ;;  %v520_v53 = vrot.slane %v518_v41, 4  ;;  %v1735_v58 = vor.u32 %v2092_v44, %v1734_v43  ;;  %v1870_v30 = vld [vmem:[%s2266_s25 + $0xf8] sm:$0xf]  ;;  %v1819_v38 = vor.u32 %v2113_v29, %v1818_v28  ;;  %v1896_v44 = vld [vmem:[%s2266_s25 + $0x90] sm:$0xf] }
  0x2a   : > { %v1871_v39 = vor.u32 %v2121_v31, %v1870_v30  ;;  %v1898_v46 = vld [vmem:[%s2266_s25 + $0x98] sm:$0xf]  ;;  %v2044_v47 = vld [vmem:[%s2266_s25 + $0x8] sm:$0xf]  ;;  %v2046_v48 = vld [vmem:[%s2266_s25 + $0x10] sm:$0xf] }
  0x2b   : > { %734 = vmatpush.bf16.msrb.mxu3 %v2115_v0  ;;  %845 = vmatpush.bf16.msrb.mxu0 %v2123_v10  ;;  %v524_v0 = vor.u32 %v523_v54, %v520_v53  ;;  %v2127_v10 = vld [vmem:[%s2650_s1 + $0xa0] sm:$0xff]  ;;  %v906_v53 = vshrl.u32 %v1898_v46, 16  ;;  %v909_v54 = vshll.u32 %v1898_v46, 16  ;;  %v1336_v55 = vshrl.u32 %v2044_v47, 16  ;;  %v1902_v28 = vld [vmem:[%s2266_s25 + $0xa8] sm:$0xf] }
  0x2c   : > { %1760 = vmatmul.msk.bf16.vlgmr.msrb.gmra.mxu1 %vm301_vm0, %v1731_v13  ;;  %1788 = vmatmul.msk.bf16.vlgmr.msrb.gmra.mxu2 %vm301_vm0, %v576_v16  ;;  %v546_v13 = vshrl.u32 %v442_v3, 16  ;;  %v1339_v56 = vshll.u32 %v2044_v47, 16  ;;  %v1350_v57 = vshrl.u32 %v2046_v48, 16 }
  0x2d   : > { %1175 = vmatpush.bf16.msra.mxu2 %v2138_v63  ;;  %1064 = vmatpush.bf16.msra.mxu1 %v2130_v4  ;;  %v510_v63 = vor.u32 %v509_v52, %v506_v51  ;;  %v515_v4 = vrot.slane %v513_v61, 5  ;;  %v525_v6 = vrot.slane %v524_v0, 4  ;;  %v892_v51 = vshrl.u32 %v1896_v44, 16 }
  0x2e   : > { %1840 = vmatmul.msk.bf16.vlgmr.msrb.gmra.mxu3 %vm301_vm0, %v1811_v17  ;;  %1892 = vmatmul.msk.bf16.vlgmr.msrb.gmra.mxu0 %vm301_vm0, %v1863_v18  ;;  %v534_v18 = vrot.slane %v532_v11, 4  ;;  %v548_v20 = vrot.slane %v546_v13, 4  ;;  %v895_v52 = vshll.u32 %v1896_v44, 16  ;;  %v908_v2 = vrot.slane %v906_v53, 4  ;;  %v2047_v11 = vld [vmem:[%s2266_s25 + $0x14] sm:$0x1] }
  0x2f   : > { %1286 = vmatpush.bf16.msra.mxu3 %v2146_v14  ;;  %1508 = vmatpush.bf16.msra.mxu0 %v2150_v15  ;;  %v511_v5 = vrot.slane %v510_v63, 4  ;;  %v549_v14 = vshll.u32 %v442_v3, 16  ;;  %v2147_v15 = vld [vmem:[%s2650_s1 + $0x100] sm:$0xff]  ;;  %v530_v17 = vsel %vm2314_vm3, %v525_v6, %v529_v7  ;;  %v1897_v63 = vld [vmem:[%s2266_s25 + $0x94] sm:$0x1]  ;;  %v894_v0 = vrot.slane %v892_v51, 4 }
  0x30   : > { %v538_v32 = vor.u32 %v537_v19, %v534_v18  ;;  %v897_v1 = vrot.slane %v895_v52, 5  ;;  %v911_v3 = vrot.slane %v909_v54, 5  ;;  %v1341_v6 = vrot.slane %v1339_v56, 5  ;;  %v1903_v53 = vld [vmem:[%s2266_s25 + $0xac] sm:$0x1] }
  0x31   : > { %1176 = vmatpush.bf16.msra.mxu2 %v2137_v23  ;;  %1065 = vmatpush.bf16.msra.mxu1 %v2129_v24  ;;  %v516_v16 = vsel %vm2314_vm3, %v511_v5, %v515_v4  ;;  %v551_v21 = vrot.slane %v549_v14, 5  ;;  %v443_v23 = vld [vmem:[%s2266_s25 + $0x3c] sm:$0x1]  ;;  %v1738_v24 = vld [vmem:[%s2266_s25 + $0x20] sm:$0xf]  ;;  %v1338_v5 = vrot.slane %v1336_v55, 4 }
  0x32   : > { %v539_v40 = vrot.slane %v538_v32, 4  ;;  %v1899_v4 = vld [vmem:[%s2266_s25 + $0x9c] sm:$0x1]  ;;  %v1352_v7 = vrot.slane %v1350_v57, 4  ;;  %v2114_v14 = vld [vmem:[%s2266_s25 + $0xc4] sm:$0xf0]  ;;  %v912_v19 = vor.u32 %v911_v3, %v908_v2 }
  0x33   : > { %1287 = vmatpush.bf16.msra.mxu3 %v2145_v25  ;;  %1509 = vmatpush.bf16.msra.mxu0 %v2149_v26  ;;  %v572_v25 = vunpack.c.l.b16 %v516_v16  ;;  %v573_v26 = vunpack.c.l.b16 %v530_v17  ;;  %v2122_v16 = vld [vmem:[%s2266_s25 + $0x10c] sm:$0xf0]  ;;  %v898_v17 = vor.u32 %v897_v1, %v894_v0  ;;  %v901_v18 = vshll.u32 %v1897_v63, 16  ;;  %v2139_v1 = vld [vmem:[%s2266_s25 + $0x54] sm:$0xf0] }
  0x34   : > { %v913_v31 = vrot.slane %v912_v19, 4  ;;  %v2010_v0 = vld [vmem:[%s2266_s25 + $0x50] sm:$0xf] }
  0x35   : > { %1177 = vmatpush.bf16.msra.mxu2 %v2136_v33  ;;  %1066 = vmatpush.bf16.msra.mxu1 %v2128_v34  ;;  %v541_v33 = vshll.u32 %v441_v22, 16  ;;  %v552_v34 = vor.u32 %v551_v21, %v548_v20  ;;  %v578_v37 = vpack.c.b16 %v573_v26, %v572_v25  ;;  %v915_v20 = vshll.u32 %v1899_v4, 16 }
  0x36   : > { %v1342_v21 = vor.u32 %v1341_v6, %v1338_v5  ;;  %v899_v29 = vrot.slane %v898_v17, 4  ;;  %v903_v30 = vrot.slane %v901_v18, 5  ;;  %v943_v5 = vshll.u32 %v1903_v53, 16 }
  0x37   : > { %1288 = vmatpush.bf16.msra.mxu3 %v2144_v35  ;;  %1510 = vmatpush.bf16.msra.mxu0 %v2148_v36  ;;  %v555_v35 = vshll.u32 %v443_v23, 16  ;;  %v1739_v36 = vor.u32 %v2093_v27, %v1738_v24  ;;  %v543_v41 = vrot.slane %v541_v33, 5  ;;  %v553_v42 = vrot.slane %v552_v34, 4  ;;  %v1900_v27 = vld [vmem:[%s2266_s25 + $0xa0] sm:$0xf] }
  0x38   : > { %v1359_v24 = vshll.u32 %v2047_v11, 16  ;;  %v917_v32 = vrot.slane %v915_v20, 5  ;;  %v1343_v33 = vrot.slane %v1342_v21, 4  ;;  %v2051_v11 = vld [vmem:[%s2266_s25 + $0x24] sm:$0x1]  ;;  %v945_v19 = vrot.slane %v943_v5, 5 }
  0x39   : > { %1178 = vmatpush.bf16.msra.mxu2 %v2135_v8  ;;  %1067 = vmatpush.bf16.msra.mxu1 %v2127_v10  ;;  %v557_v43 = vrot.slane %v555_v35, 5  ;;  %v544_v49 = vsel %vm2314_vm3, %v539_v40, %v543_v41  ;;  %v2045_v10 = vld [vmem:[%s2266_s25 + $0xc] sm:$0x1]  ;;  %v937_v40 = vshll.u32 %v1902_v28, 16  ;;  %v2048_v41 = vld [vmem:[%s2266_s25 + $0x18] sm:$0xf] }
  0x3a   : > { %v574_v61 = vunpack.c.l.b16 %v544_v49  ;;  %v1345_v22 = vshll.u32 %v2045_v10, 16  ;;  %v918_v44 = vsel %vm2314_vm3, %v913_v31, %v917_v32  ;;  %v1364_v54 = vshrl.u32 %v2048_v41, 16  ;;  %v2049_v10 = vld [vmem:[%s2266_s25 + $0x1c] sm:$0x1] }
  0x3b   : > { %1289 = vmatpush.bf16.msra.mxu3 %v2143_v9  ;;  %1511 = vmatpush.bf16.msra.mxu0 %v2147_v15  ;;  %v558_v50 = vsel %vm2314_vm3, %v553_v42, %v557_v43  ;;  %v1822_v9 = vld [vmem:[%s2266_s25 + $0xc0] sm:$0xf]  ;;  %v1874_v15 = vld [vmem:[%s2266_s25 + $0x108] sm:$0xf]  ;;  %v904_v43 = vsel %vm2314_vm3, %v899_v29, %v903_v30  ;;  %v939_v52 = vrot.slane %v937_v40, 5  ;;  %v1367_v55 = vshll.u32 %v2048_v41, 16 }
  0x3c   : > { %1761 = vmatmul.msk.bf16.gmra.mxu1 %vm301_vm0, %v1735_v58  ;;  %1789 = vmatmul.msk.bf16.gmra.mxu2 %vm301_vm0, %v577_v59  ;;  %v1353_v58 = vshll.u32 %v2046_v48, 16  ;;  %v1742_v59 = vld [vmem:[%s2266_s25 + $0x30] sm:$0xf]  ;;  %v1823_v25 = vor.u32 %v2114_v14, %v1822_v9  ;;  %v1875_v26 = vor.u32 %v2122_v16, %v1874_v15  ;;  %v1347_v34 = vrot.slane %v1345_v22, 5  ;;  %v2050_v42 = vld [vmem:[%s2266_s25 + $0x20] sm:$0xf] }
  0x3d   : > { %v1901_v48 = vld [vmem:[%s2266_s25 + $0xa4] sm:$0x1]  ;;  %v1378_v56 = vshrl.u32 %v2050_v42, 16  ;;  %v1381_v57 = vshll.u32 %v2050_v42, 16  ;;  %v1366_v6 = vrot.slane %v1364_v54, 4  ;;  %v2011_v14 = vor.u32 %v2139_v1, %v2010_v0 }
  0x3e   : > { %1841 = vmatmul.msk.bf16.gmra.mxu3 %vm301_vm0, %v1815_v60  ;;  %1893 = vmatmul.msk.bf16.gmra.mxu0 %vm301_vm0, %v1867_v62  ;;  %v2094_v60 = vld [vmem:[%s2266_s25 + $0x34] sm:$0xf0]  ;;  %v575_v62 = vunpack.c.l.b16 %v558_v50  ;;  %v1355_v8 = vrot.slane %v1353_v58, 5  ;;  %v1348_v46 = vsel %vm2314_vm3, %v1343_v33, %v1347_v34  ;;  %v1012_v58 = vunpack.c.l.b16 %v904_v43  ;;  %v2054_v29 = vld [vmem:[%s2266_s25 + $0x30] sm:$0xf] }
  0x3f   : > { %v1743_v12 = vor.u32 %v2094_v60, %v1742_v59  ;;  %v1013_v59 = vunpack.c.l.b16 %v918_v44  ;;  %v1958_v60 = vld [vmem:[%s2266_s25 + $0x8] sm:$0xf]  ;;  %v929_v3 = vshll.u32 %v1901_v48, 16  ;;  %v1383_v9 = vrot.slane %v1381_v57, 5  ;;  %v1962_v44 = vld [vmem:[%s2266_s25 + $0x18] sm:$0xf] }
  0x40   : > { %v579_v13 = vpack.c.b16 %v575_v62, %v574_v61  ;;  %v1356_v23 = vor.u32 %v1355_v8, %v1352_v7  ;;  %v2131_v61 = vld [vmem:[%s2266_s25 + $0xc] sm:$0xf0]  ;;  %v1456_v62 = vunpack.c.l.b16 %v1348_v46  ;;  %v1369_v7 = vrot.slane %v1367_v55, 5  ;;  %v2132_v46 = vld [vmem:[%s2266_s25 + $0x1c] sm:$0xf0] }
  0x41   : > { %v1380_v8 = vrot.slane %v1378_v56, 4  ;;  %v931_v17 = vrot.slane %v929_v3, 5  ;;  %v1373_v21 = vshll.u32 %v2049_v10, 16  ;;  %v1406_v40 = vshrl.u32 %v2054_v29, 16  ;;  %v1907_v54 = vld [vmem:[%s2266_s25 + $0xbc] sm:$0x1] }
  0x42   : > { %v1357_v35 = vrot.slane %v1356_v23, 4  ;;  %v1370_v20 = vor.u32 %v1369_v7, %v1366_v6  ;;  %v1387_v23 = vshll.u32 %v2051_v11, 16  ;;  %v1409_v41 = vshll.u32 %v2054_v29, 16  ;;  %v2014_v1 = vld [vmem:[%s2266_s25 + $0x60] sm:$0xf] }
  0x43   : > { %v1384_v22 = vor.u32 %v1383_v9, %v1380_v8  ;;  %v1375_v31 = vrot.slane %v1373_v21, 5  ;;  %v1408_v57 = vrot.slane %v1406_v40, 4  ;;  %v1963_v0 = vor.u32 %v2132_v46, %v1962_v44  ;;  %v1908_v21 = vld [vmem:[%s2266_s25 + $0xc0] sm:$0xf]  ;;  %v2133_v40 = vld [vmem:[%s2266_s25 + $0x2c] sm:$0xf0] }
  0x44   : > { %v1371_v30 = vrot.slane %v1370_v20, 4  ;;  %v1389_v33 = vrot.slane %v1387_v23, 5  ;;  %v971_v6 = vshll.u32 %v1907_v54, 16  ;;  %v2056_v23 = vld [vmem:[%s2266_s25 + $0x38] sm:$0xf]  ;;  %v976_v29 = vshrl.u32 %v1908_v21, 16 }
  0x45   : > { %v1385_v32 = vrot.slane %v1384_v22, 4  ;;  %v1910_v22 = vld [vmem:[%s2266_s25 + $0xc8] sm:$0xf]  ;;  %v1909_v46 = vld [vmem:[%s2266_s25 + $0xc4] sm:$0x1] }
  0x47   : > { %v1390_v48 = vsel %vm2314_vm3, %v1385_v32, %v1389_v33  ;;  %v993_v32 = vshll.u32 %v1910_v22, 16  ;;  %v1420_v33 = vshrl.u32 %v2056_v23, 16 }
  0x4c   : > { %1762 = vmatmul.msk.bf16.gmra.mxu1 %vm301_vm0, %v1739_v36  ;;  %1790 = vmatmul.msk.bf16.gmra.mxu2 %vm301_vm0, %v578_v37  ;;  %v1361_v36 = vrot.slane %v1359_v24, 5  ;;  %v920_v37 = vshrl.u32 %v1900_v27, 16  ;;  %v1904_v24 = vld [vmem:[%s2266_s25 + $0xb0] sm:$0xf] }
  0x4d   : > { %v948_v34 = vshrl.u32 %v1904_v24, 16 }
  0x4e   : > { %1842 = vmatmul.msk.bf16.gmra.mxu3 %vm301_vm0, %v1819_v38  ;;  %1894 = vmatmul.msk.bf16.gmra.mxu0 %vm301_vm0, %v1871_v39  ;;  %v923_v38 = vshll.u32 %v1900_v27, 16  ;;  %v934_v39 = vshrl.u32 %v1902_v28, 16  ;;  %v1362_v47 = vsel %vm2314_vm3, %v1357_v35, %v1361_v36  ;;  %v922_v49 = vrot.slane %v920_v37, 4  ;;  %v2052_v28 = vld [vmem:[%s2266_s25 + $0x28] sm:$0xf] }
  0x4f   : > { %v1457_v63 = vunpack.c.l.b16 %v1362_v47  ;;  %v951_v35 = vshll.u32 %v1904_v24, 16  ;;  %v1376_v47 = vsel %vm2314_vm3, %v1371_v30, %v1375_v31  ;;  %v2058_v24 = vld [vmem:[%s2266_s25 + $0x40] sm:$0xf]  ;;  %v979_v30 = vshll.u32 %v1908_v21, 16 }
  0x50   : > { %v925_v50 = vrot.slane %v923_v38, 5  ;;  %v936_v51 = vrot.slane %v934_v39, 4  ;;  %v1392_v38 = vshrl.u32 %v2052_v28, 16  ;;  %v1395_v39 = vshll.u32 %v2052_v28, 16  ;;  %v2134_v21 = vld [vmem:[%s2266_s25 + $0x3c] sm:$0xf0] }
  0x51   : > { %v1464_v15 = vpack.c.b16 %v1457_v63, %v1456_v62  ;;  %v2055_v62 = vld [vmem:[%s2266_s25 + $0x34] sm:$0x1]  ;;  %v990_v31 = vshrl.u32 %v1910_v22, 16 }
  0x52   : > { %v926_v2 = vor.u32 %v925_v50, %v922_v49  ;;  %v940_v4 = vor.u32 %v939_v52, %v936_v51  ;;  %v1905_v49 = vld [vmem:[%s2266_s25 + $0xb4] sm:$0x1]  ;;  %v950_v50 = vrot.slane %v948_v34, 4  ;;  %v953_v51 = vrot.slane %v951_v35, 5 }
  0x53   : > { %v1394_v55 = vrot.slane %v1392_v38, 4  ;;  %v1397_v56 = vrot.slane %v1395_v39, 5  ;;  %v1415_v10 = vshll.u32 %v2055_v62, 16  ;;  %v1423_v34 = vshll.u32 %v2056_v23, 16 }
  0x54   : > { %v927_v16 = vrot.slane %v926_v2, 4  ;;  %v941_v18 = vrot.slane %v940_v4, 4  ;;  %v2140_v2 = vld [vmem:[%s2266_s25 + $0x64] sm:$0xf0]  ;;  %v954_v3 = vor.u32 %v953_v51, %v950_v50  ;;  %v957_v4 = vshll.u32 %v1905_v49, 16 }
  0x55   : > { %v1398_v7 = vor.u32 %v1397_v56, %v1394_v55  ;;  %v2015_v11 = vor.u32 %v2140_v2, %v2014_v1  ;;  %v1417_v20 = vrot.slane %v1415_v10, 5  ;;  %v1434_v35 = vshrl.u32 %v2058_v24, 16  ;;  %v1911_v51 = vld [vmem:[%s2266_s25 + $0xcc] sm:$0x1]  ;;  %v2057_v56 = vld [vmem:[%s2266_s25 + $0x3c] sm:$0x1] }
  0x56   : > { %v946_v27 = vsel %vm2314_vm3, %v941_v18, %v945_v19  ;;  %v992_v49 = vrot.slane %v990_v31, 4  ;;  %v995_v50 = vrot.slane %v993_v32, 5  ;;  %v999_v1 = vshll.u32 %v1911_v51, 16 }
  0x57   : > { %v1015_v43 = vunpack.c.l.b16 %v946_v27  ;;  %v1436_v54 = vrot.slane %v1434_v35, 4 }
  0x5c   : > { %1763 = vmatmul.msk.bf16.gmra.mxu1 %vm301_vm0, %v1743_v12  ;;  %1791 = vmatmul.msk.bf16.gmra.mxu2 %vm301_vm0, %v579_v13  ;;  %v1020_v12 = vpack.c.b16 %v1013_v59, %v1012_v58  ;;  %v1959_v13 = vor.u32 %v2131_v61, %v1958_v60  ;;  %v1411_v58 = vrot.slane %v1409_v41, 5  ;;  %v1458_v59 = vunpack.c.l.b16 %v1376_v47  ;;  %v2053_v61 = vld [vmem:[%s2266_s25 + $0x2c] sm:$0x1]  ;;  %v2018_v41 = vld [vmem:[%s2266_s25 + $0x70] sm:$0xf] }
  0x5d   : > { %v1459_v60 = vunpack.c.l.b16 %v1390_v48  ;;  %v1401_v8 = vshll.u32 %v2053_v61, 16  ;;  %v978_v47 = vrot.slane %v976_v29, 4  ;;  %v981_v48 = vrot.slane %v979_v30, 5 }
  0x5e   : > { %1843 = vmatmul.msk.bf16.gmra.mxu3 %vm301_vm0, %v1823_v25  ;;  %1895 = vmatmul.msk.bf16.gmra.mxu0 %vm301_vm0, %v1875_v26  ;;  %v1906_v25 = vld [vmem:[%s2266_s25 + $0xb8] sm:$0xf]  ;;  %v932_v26 = vsel %vm2314_vm3, %v927_v16, %v931_v17  ;;  %v1412_v9 = vor.u32 %v1411_v58, %v1408_v57  ;;  %v973_v16 = vrot.slane %v971_v6, 5  ;;  %v1399_v17 = vrot.slane %v1398_v7, 4  ;;  %v2059_v57 = vld [vmem:[%s2266_s25 + $0x44] sm:$0x1] }
  0x5f   : > { %v962_v36 = vshrl.u32 %v1906_v25, 16  ;;  %v965_v37 = vshll.u32 %v1906_v25, 16  ;;  %v1014_v42 = vunpack.c.l.b16 %v932_v26  ;;  %v1403_v18 = vrot.slane %v1401_v8, 5 }
  0x60   : > { %v1413_v19 = vrot.slane %v1412_v9, 4  ;;  %v982_v62 = vor.u32 %v981_v48, %v978_v47  ;;  %v1001_v9 = vrot.slane %v999_v1, 5 }
  0x61   : > { %v964_v52 = vrot.slane %v962_v36, 4  ;;  %v967_v53 = vrot.slane %v965_v37, 5  ;;  %v1021_v63 = vpack.c.b16 %v1015_v43, %v1014_v42  ;;  %v1404_v27 = vsel %vm2314_vm3, %v1399_v17, %v1403_v18  ;;  %v1966_v37 = vld [vmem:[%s2266_s25 + $0x28] sm:$0xf]  ;;  %v2141_v42 = vld [vmem:[%s2266_s25 + $0x74] sm:$0xf0] }
  0x62   : > { %v1418_v28 = vsel %vm2314_vm3, %v1413_v19, %v1417_v20  ;;  %v1437_v36 = vshll.u32 %v2058_v24, 16  ;;  %v1460_v43 = vunpack.c.l.b16 %v1404_v27  ;;  %v983_v6 = vrot.slane %v982_v62, 4  ;;  %v1970_v20 = vld [vmem:[%s2266_s25 + $0x38] sm:$0xf]  ;;  %v2022_v24 = vld [vmem:[%s2266_s25 + $0x80] sm:$0xf] }
  0x63   : > { %v968_v5 = vor.u32 %v967_v53, %v964_v52  ;;  %v1461_v44 = vunpack.c.l.b16 %v1418_v28  ;;  %v1422_v52 = vrot.slane %v1420_v33, 4  ;;  %v1425_v53 = vrot.slane %v1423_v34, 5 }
  0x64   : > { %v1439_v55 = vrot.slane %v1437_v36, 5  ;;  %v1971_v27 = vor.u32 %v2134_v21, %v1970_v20 }
  0x65   : > { %v1466_v61 = vpack.c.b16 %v1461_v44, %v1460_v43  ;;  %v1426_v2 = vor.u32 %v1425_v53, %v1422_v52 }
  0x67   : > { %v1427_v10 = vrot.slane %v1426_v2, 4 }
  0x6c   : > { %1936 = vmatmul.msk.bf16.vlgmr.msra.gmra.mxu1 %vm301_vm0, %v1020_v12  ;;  %1988 = vmatmul.msk.bf16.vlgmr.msra.gmra.mxu2 %vm301_vm0, %v1959_v13  ;;  %v1465_v12 = vpack.c.b16 %v1459_v60, %v1458_v59  ;;  %v955_v13 = vrot.slane %v954_v3, 4  ;;  %v1967_v59 = vor.u32 %v2133_v40, %v1966_v37  ;;  %v2019_v60 = vor.u32 %v2141_v42, %v2018_v41 }
  0x6d   : > { %v1429_v3 = vshll.u32 %v2057_v56, 16 }
  0x6e   : > { %2040 = vmatmul.msk.bf16.vlgmr.msra.gmra.mxu3 %vm301_vm0, %v2011_v14  ;;  %2084 = vmatmul.msk.bf16.vlgmr.msra.gmra.mxu0 %vm301_vm0, %v1464_v15  ;;  %v959_v14 = vrot.slane %v957_v4, 5  ;;  %v969_v15 = vrot.slane %v968_v5, 4  ;;  %v1440_v4 = vor.u32 %v1439_v55, %v1436_v54  ;;  %v1443_v5 = vshll.u32 %v2059_v57, 16 }
  0x70   : > { %v960_v25 = vsel %vm2314_vm3, %v955_v13, %v959_v14  ;;  %v974_v26 = vsel %vm2314_vm3, %v969_v15, %v973_v16  ;;  %v1445_v13 = vrot.slane %v1443_v5, 5 }
  0x71   : > { %v1016_v38 = vunpack.c.l.b16 %v960_v25  ;;  %v1017_v39 = vunpack.c.l.b16 %v974_v26  ;;  %v2142_v25 = vld [vmem:[%s2266_s25 + $0x84] sm:$0xf0]  ;;  %s2090_s25 = sshll.u32 %s2660_s12, 6 }
  0x72   : > { %v2023_v29 = vor.u32 %v2142_v25, %v2022_v24  ;;  %s2602_s30 = scalar_lea.vmem %s2652_s3, %s2090_s25 }
  0x73   : > { %v1022_v58 = vpack.c.b16 %v1017_v39, %v1016_v38 }
  0x7c   : > { %1937 = vmatmul.msk.bf16.gmra.mxu1 %vm301_vm0, %v1021_v63  ;;  %1989 = vmatmul.msk.bf16.gmra.mxu2 %vm301_vm0, %v1963_v0  ;;  %v985_v63 = vshll.u32 %v1909_v46, 16  ;;  %v996_v0 = vor.u32 %v995_v50, %v992_v49 }
  0x7e   : > { %2041 = vmatmul.msk.bf16.gmra.mxu3 %vm301_vm0, %v2015_v11  ;;  %2085 = vmatmul.msk.bf16.gmra.mxu0 %vm301_vm0, %v1465_v12  ;;  %v987_v7 = vrot.slane %v985_v63, 5  ;;  %v997_v8 = vrot.slane %v996_v0, 4  ;;  %v1431_v11 = vrot.slane %v1429_v3, 5  ;;  %v1441_v12 = vrot.slane %v1440_v4, 4 }
  0x80   : > { %v988_v14 = vsel %vm2314_vm3, %v983_v6, %v987_v7  ;;  %v1002_v15 = vsel %vm2314_vm3, %v997_v8, %v1001_v9  ;;  %v1432_v16 = vsel %vm2314_vm3, %v1427_v10, %v1431_v11  ;;  %v1446_v17 = vsel %vm2314_vm3, %v1441_v12, %v1445_v13 }
  0x81   : > { %v1018_v18 = vunpack.c.l.b16 %v988_v14  ;;  %v1019_v19 = vunpack.c.l.b16 %v1002_v15  ;;  %v1462_v22 = vunpack.c.l.b16 %v1432_v16  ;;  %v1463_v23 = vunpack.c.l.b16 %v1446_v17 }
  0x83   : > { %v1023_v26 = vpack.c.b16 %v1019_v19, %v1018_v18  ;;  %v1467_v30 = vpack.c.b16 %v1463_v23, %v1462_v22  ;;  %v2597_v22 = vld [vmem:[%s2651_s2] ss:$0 sm:$0xff] }
  0x8c   : > { %1938 = vmatmul.msk.bf16.gmra.mxu1 %vm301_vm0, %v1022_v58  ;;  %1990 = vmatmul.msk.bf16.gmra.mxu2 %vm301_vm0, %v1967_v59 }
  0x8e   : > { %2042 = vmatmul.msk.bf16.gmra.mxu3 %vm301_vm0, %v2019_v60  ;;  %2086 = vmatmul.msk.bf16.gmra.mxu0 %vm301_vm0, %v1466_v61 }
  0x99   : > { %v328_v28 = vpop.f32.mrf.mxu1 }
  0x9b   : > { %v323_v31 = vpop.f32.mrf.mxu0 }
  0x9c   : > { %1939 = vmatmul.msk.bf16.gmra.mxu1 %vm301_vm0, %v1023_v26  ;;  %1991 = vmatmul.msk.bf16.gmra.mxu2 %vm301_vm0, %v1971_v27 }
  0x9e   : > { %2043 = vmatmul.msk.bf16.gmra.mxu3 %vm301_vm0, %v2023_v29  ;;  %2087 = vmatmul.msk.bf16.gmra.mxu0 %vm301_vm0, %v1467_v30 }
  0x9f   : > { %v2553_v45 = vpop.f32.mrf.mxu2 }
  0xa1   : > { %v2555_v32 = vpop.f32.mrf.mxu3  ;;  %v2557_v33 = vpop.f32.mrf.mxu1 }
  0xa3   : > { %v325_v34 = vpop.f32.mrf.mxu0 }
  0xa7   : > { %v2559_v35 = vpop.f32.mrf.mxu2 }
  0xa9   : > { %v2561_v36 = vpop.f32.mrf.mxu3  ;;  %v408_v37 = vpop.f32.mrf.mxu1 }
  0xaa   : > { %v409_v3 = vadd.f32 %v408_v37, %v323_v31 }
  0xab   : > { %v847_v38 = vpop.f32.mrf.mxu0 }
  0xaf   : > { %v625_v39 = vpop.f32.mrf.mxu2 }
  0xb0   : > { %v645_v5 = vadd.f32 %v625_v39, %v409_v3 }
  0xb1   : > { %v736_v40 = vpop.f32.mrf.mxu3  ;;  %v410_v41 = vpop.f32.mrf.mxu1 }
  0xb2   : > { %v756_v7 = vadd.f32 %v736_v40, %v645_v5  ;;  %v411_v10 = vadd.f32 %v410_v41, %v325_v34 }
  0xb3   : > { %v849_v42 = vpop.f32.mrf.mxu0 }
  0xb4   : > { %v867_v13 = vadd.f32 %v847_v38, %v756_v7 }
  0xb7   : > { %v627_v43 = vpop.f32.mrf.mxu2 }
  0xb8   : > { %v646_v12 = vadd.f32 %v627_v43, %v411_v10 }
  0xb9   : > { %v738_v44 = vpop.f32.mrf.mxu3  ;;  %v413_v46 = vpop.f32.mrf.mxu1 }
  0xba   : > { %v757_v16 = vadd.f32 %v738_v44, %v646_v12  ;;  %v414_v20 = vadd.f32 %v413_v46, %v328_v28 }
  0xbb   : > { %v852_v47 = vpop.f32.mrf.mxu0 }
  0xbc   : > { %v868_v26 = vadd.f32 %v849_v42, %v757_v16 }
  0xbf   : > { %v630_v48 = vpop.f32.mrf.mxu2 }
  0xc0   : > { %v647_v24 = vadd.f32 %v630_v48, %v414_v20 }
  0xc1   : > { %v741_v49 = vpop.f32.mrf.mxu3  ;;  %v415_v50 = vpop.f32.mrf.mxu1 }
  0xc2   : > { %v758_v30 = vadd.f32 %v741_v49, %v647_v24  ;;  %v416_v38 = vadd.f32 %v415_v50, %v2557_v33 }
  0xc3   : > { %v2563_v51 = vpop.f32.mrf.mxu0 }
  0xc4   : > { %v869_v43 = vadd.f32 %v852_v47, %v758_v30 }
  0xc7   : > { %v632_v52 = vpop.f32.mrf.mxu2 }
  0xc8   : > { %v648_v41 = vadd.f32 %v632_v52, %v416_v38 }
  0xc9   : > { %v743_v53 = vpop.f32.mrf.mxu3  ;;  %v418_v54 = vpop.f32.mrf.mxu1 }
  0xca   : > { %v759_v3 = vadd.f32 %v743_v53, %v648_v41 }
  0xcb   : > { %v2565_v55 = vpop.f32.mrf.mxu0 }
  0xcc   : > { %v870_v52 = vadd.f32 %v2563_v51, %v759_v3 }
  0xcf   : > { %v635_v56 = vpop.f32.mrf.mxu2 }
  0xd1   : > { %v2567_v57 = vpop.f32.mrf.mxu3  ;;  %v2569_v58 = vpop.f32.mrf.mxu1 }
  0xd3   : > { %v2571_v59 = vpop.f32.mrf.mxu0 }
  0xd7   : > { %v2573_v60 = vpop.f32.mrf.mxu2 }
  0xd9   : > { %v2575_v61 = vpop.f32.mrf.mxu3  ;;  %v2577_v62 = vpop.f32.mrf.mxu1 }
  0xdb   : > { %v2579_v63 = vpop.f32.mrf.mxu0 }
  0xdf   : > { %v2581_v0 = vpop.f32.mrf.mxu2 }
  0xe1   : > { %v2583_v1 = vpop.f32.mrf.mxu3  ;;  %v2585_v2 = vpop.f32.mrf.mxu1 }
  0xe3   : > { %v2587_v4 = vpop.f32.mrf.mxu0 }
  0xe7   : > { %v2589_v6 = vpop.f32.mrf.mxu2 }
  0xe9   : > { %v2591_v8 = vpop.f32.mrf.mxu3  ;;  %v1069_v9 = vpop.f32.mrf.mxu1 }
  0xea   : > { %v1089_v14 = vadd.f32 %v1069_v9, %v867_v13  ;;  %v419_v9 = vadd.f32 %v418_v54, %v2553_v45  ;;  %v421_v45 = vadd.f32 %v2569_v58, %v2559_v35  ;;  %v424_v35 = vadd.f32 %v2577_v62, %v2555_v32 }
  0xeb   : > { %v1513_v11 = vpop.f32.mrf.mxu0  ;;  %v426_v32 = vadd.f32 %v2585_v2, %v2561_v36 }
  0xec   : > { %v649_v33 = vadd.f32 %v635_v56, %v419_v9  ;;  %v650_v56 = vadd.f32 %v2573_v60, %v421_v45  ;;  %v651_v60 = vadd.f32 %v2581_v0, %v424_v35 }
  0xed   : > { %v652_v0 = vadd.f32 %v2589_v6, %v426_v32 }
  0xef   : > { %v1180_v15 = vpop.f32.mrf.mxu2 }
  0xf0   : > { %v1200_v17 = vadd.f32 %v1180_v15, %v1089_v14  ;;  %v760_v14 = vadd.f32 %v2567_v57, %v649_v33  ;;  %v761_v57 = vadd.f32 %v2575_v61, %v650_v56  ;;  %v762_v61 = vadd.f32 %v2583_v1, %v651_v60 }
  0xf1   : > { %v1291_v18 = vpop.f32.mrf.mxu3  ;;  %v1071_v19 = vpop.f32.mrf.mxu1  ;;  %v763_v1 = vadd.f32 %v2591_v8, %v652_v0 }
  0xf2   : > { %v1311_v21 = vadd.f32 %v1291_v18, %v1200_v17  ;;  %v1090_v28 = vadd.f32 %v1071_v19, %v868_v26  ;;  %v871_v51 = vadd.f32 %v2565_v55, %v760_v14  ;;  %v872_v55 = vadd.f32 %v2571_v59, %v761_v57 }
  0xf3   : > { %v1515_v23 = vpop.f32.mrf.mxu0  ;;  %v873_v59 = vadd.f32 %v2579_v63, %v762_v61  ;;  %v874_v6 = vadd.f32 %v2587_v4, %v763_v1 }
  0xf4   : > { %v1533_v25 = vadd.f32 %v1513_v11, %v1311_v21 }
  0xf6   : > { %v1545_v27 = vadd.f32 %v2597_v22, %v1533_v25 }
  0xf7   : > { %v1182_v29 = vpop.f32.mrf.mxu2 }
  0xf8   : > { %1553 = vst [vmem:[%s2602_s30] sm:$0xff] %v1545_v27  ;;  %v1201_v31 = vadd.f32 %v1182_v29, %v1090_v28 }
  0xf9   : > { %v1293_v34 = vpop.f32.mrf.mxu3  ;;  %v1074_v37 = vpop.f32.mrf.mxu1 }
  0xfa   : > { %v1312_v39 = vadd.f32 %v1293_v34, %v1201_v31  ;;  %v1091_v46 = vadd.f32 %v1074_v37, %v869_v43 }
  0xfb   : > { %v1518_v40 = vpop.f32.mrf.mxu0 }
  0xfc   : > { %v1534_v42 = vadd.f32 %v1515_v23, %v1312_v39 }
  0xfe   : > { %v1546_v44 = vadd.f32 %v2597_v22, %v1534_v42 }
  0xff   : > { %v1185_v48 = vpop.f32.mrf.mxu2 }
 0x100   : > { %1554 = vst [vmem:[%s2602_s30 + $0x8] sm:$0xff] %v1546_v44  ;;  %v1202_v5 = vadd.f32 %v1185_v48, %v1091_v46 }
 0x101   : > { %v1296_v49 = vpop.f32.mrf.mxu3  ;;  %v1076_v7 = vpop.f32.mrf.mxu1 }
 0x102   : > { %v1313_v10 = vadd.f32 %v1296_v49, %v1202_v5  ;;  %v1092_v12 = vadd.f32 %v1076_v7, %v870_v52 }
 0x103   : > { %v1520_v11 = vpop.f32.mrf.mxu0 }
 0x104   : > { %v1535_v50 = vadd.f32 %v1518_v40, %v1313_v10 }
 0x106   : > { %v1547_v47 = vadd.f32 %v2597_v22, %v1535_v50 }
 0x107   : > { %v1187_v13 = vpop.f32.mrf.mxu2 }
 0x108   : > { %1555 = vst [vmem:[%s2602_s30 + $0x10] sm:$0xff] %v1547_v47  ;;  %v1203_v53 = vadd.f32 %v1187_v13, %v1092_v12 }
 0x109   : > { %v1298_v15 = vpop.f32.mrf.mxu3  ;;  %v1079_v16 = vpop.f32.mrf.mxu1 }
 0x10a   : > { %v1314_v54 = vadd.f32 %v1298_v15, %v1203_v53  ;;  %v1093_v20 = vadd.f32 %v1079_v16, %v871_v51 }
 0x10b   : > { %v1523_v18 = vpop.f32.mrf.mxu0 }
 0x10c   : > { %v1536_v17 = vadd.f32 %v1520_v11, %v1314_v54 }
 0x10e   : > { %v1548_v19 = vadd.f32 %v2597_v22, %v1536_v17 }
 0x10f   : > { %v1190_v21 = vpop.f32.mrf.mxu2 }
 0x110   : > { %1556 = vst [vmem:[%s2602_s30 + $0x18] sm:$0xff] %v1548_v19  ;;  %v1204_v23 = vadd.f32 %v1190_v21, %v1093_v20 }
 0x111   : > { %v1301_v24 = vpop.f32.mrf.mxu3  ;;  %v1081_v25 = vpop.f32.mrf.mxu1 }
 0x112   : > { %v1315_v58 = vadd.f32 %v1301_v24, %v1204_v23  ;;  %v1094_v28 = vadd.f32 %v1081_v25, %v872_v55 }
 0x113   : > { %v1525_v29 = vpop.f32.mrf.mxu0 }
 0x114   : > { %v1537_v26 = vadd.f32 %v1523_v18, %v1315_v58 }
 0x116   : > { %v1549_v27 = vadd.f32 %v2597_v22, %v1537_v26 }
 0x117   : > { %v1192_v30 = vpop.f32.mrf.mxu2 }
 0x118   : > { %1557 = vst [vmem:[%s2602_s30 + $0x20] sm:$0xff] %v1549_v27  ;;  %v1205_v31 = vadd.f32 %v1192_v30, %v1094_v28 }
 0x119   : > { %v1303_v34 = vpop.f32.mrf.mxu3  ;;  %v1084_v37 = vpop.f32.mrf.mxu1 }
 0x11a   : > { %v1316_v62 = vadd.f32 %v1303_v34, %v1205_v31  ;;  %v1095_v40 = vadd.f32 %v1084_v37, %v873_v59 }
 0x11b   : > { %v1528_v44 = vpop.f32.mrf.mxu0 }
 0x11c   : > { %v1538_v38 = vadd.f32 %v1525_v29, %v1316_v62 }
 0x11e   : > { %v1550_v39 = vadd.f32 %v2597_v22, %v1538_v38 }
 0x11f   : > { %v1195_v41 = vpop.f32.mrf.mxu2 }
 0x120   : > { %1558 = vst [vmem:[%s2602_s30 + $0x28] sm:$0xff] %v1550_v39  ;;  %v1206_v42 = vadd.f32 %v1195_v41, %v1095_v40 }
 0x121   : > { %v1306_v43 = vpop.f32.mrf.mxu3  ;;  %v1086_v36 = vpop.f32.mrf.mxu1 }
 0x122   : > { %v1317_v46 = vadd.f32 %v1306_v43, %v1206_v42  ;;  %v1096_v63 = vadd.f32 %v1086_v36, %v874_v6 }
 0x123   : > { %v1530_v9 = vpop.f32.mrf.mxu0 }
 0x124   : > { %v1539_v2 = vadd.f32 %v1528_v44, %v1317_v46 }
 0x126   : > { %v1551_v48 = vadd.f32 %v2597_v22, %v1539_v2 }
 0x127   : > { %v1197_v3 = vpop.f32.mrf.mxu2 }
 0x128   : > { %1559 = vst [vmem:[%s2602_s30 + $0x30] sm:$0xff] %v1551_v48  ;;  %v1207_v5 = vadd.f32 %v1197_v3, %v1096_v63 }
 0x129   : > { %v1308_v49 = vpop.f32.mrf.mxu3 }
 0x12a   : > { %v1318_v7 = vadd.f32 %v1308_v49, %v1207_v5 }
 0x12c   : > { %v1540_v8 = vadd.f32 %v1530_v9, %v1318_v7 }
 0x12e   : > { %v1552_v10 = vadd.f32 %v2597_v22, %v1540_v8 }
 0x130   : > { %1560 = vst [vmem:[%s2602_s30 + $0x38] sm:$0xff] %v1552_v10 }
 0x131 PF: > { %s13_s14 = sadd.s32 1, %s2211_s14   ;;  %s2655_s12 = smov %s2207_s13 }
 0x132   : > { %p10_p5 = scmp.ge.s32.totalorder %s13_s14, 4   ;;  %s2656_s13 = smov %s2658_s15 }
 0x134   :  { %12 = sbr.rel (!%p10_p5) target bundleno = 2 (0x2), region = 81 }

</bundles_post_ra>
